<compile_context>
chip_gen: v5e
topology: v5e:2x2
jax: 0.10.0
libtpu: 0.0.40
codegen_flags: <defaults>
</compile_context>

<pallas_src>
import functools

import jax
import jax.numpy as jnp
import numpy as np
from jax import lax
from jax.experimental import pallas as pl
from jax.experimental.pallas import tpu as pltpu


def _round_up(x, m):
    return ((x + m - 1) // m) * m


def _tpu_params():
    """Returns (vmem_capacity_bytes, num_tensorcores) with safe fallbacks."""
    try:
        vmem_cap = int(pltpu.get_tpu_info().vmem_capacity_bytes)
    except Exception:
        vmem_cap = 64 << 20  # conservative fallback
    # Heuristic: v7x (64 MiB VMEM per TC) has 2 TensorCores per chip worth
    # sharding the leading "parallel" grid axis across; v5e/v6e (128 MiB VMEM)
    # are single-TC so an extra split is pure overhead.
    num_tc = 2 if vmem_cap <= (64 << 20) else 1
    return vmem_cap, num_tc


def _choose_tn(n, c, itemsize, *, budget_bytes, max_tn=2048):
    """Largest row tile (multiple of 8) fitting the VMEM budget.

    Budget conservatively models 2 inputs x ~3 pipeline buffers in the input
    dtype plus ~4 f32-sized (tn, C) intermediates for the in-register
    log-softmax.
    """
    per_row = c * (6 * itemsize + 4 * 4)
    tn = budget_bytes // max(per_row, 1)
    tn = min(int(tn), max_tn, _round_up(n, 8))
    return max(8, (tn // 8) * 8)


def _fold_rows(x, n_par=8):
    """Sum a (tn, C) tile into an (8, C) vreg-shaped partial.

    Uses sublane-aligned static 8-row slices with `n_par` independent partial
    accumulators + a final tree combine, so the fold is not one long serial
    vadd dependence chain.
    """
    tn, _ = x.shape
    n_chunks = tn // 8
    chunks = [x[i * 8:(i + 1) * 8, :] for i in range(n_chunks)]
    k = min(n_par, n_chunks)
    parts = list(chunks[:k])
    for r in range(k, n_chunks):
        parts[r % k] = parts[r % k] + chunks[r]
    while len(parts) > 1:
        nxt = [parts[i] + parts[i + 1] for i in range(0, len(parts) - 1, 2)]
        if len(parts) % 2:
            nxt.append(parts[-1])
        parts = nxt
    return parts[0]


def _soft_label_loss_kernel(pred_ref, target_ref, out_ref, acc_ref, *,
                            n_rows, tn):
    g = pl.program_id(0)            # split (parallel) index
    j = pl.program_id(1)            # row-tile (reduction) index within split
    tiles_per_split = pl.num_programs(1)

    # Zero the running accumulator at the start of each split's reduction.
    @pl.when(j == 0)
    def _():
        acc_ref[...] = jnp.zeros_like(acc_ref)

    tile_idx = g * tiles_per_split + j          # global, unclamped tile index
    tile_start = tile_idx * tn

    # Skip all compute on fully padded / clamped duplicate tiles.
    @pl.when(tile_start < n_rows)
    def _():
        p = pred_ref[...].astype(jnp.float32)      # (TN, C)
        t = target_ref[...].astype(jnp.float32)    # (TN, C)

        # Numerically stable log_softmax along the lane (class) axis; avoid
        # materializing logp:  -t * log_softmax(p) == t * (lse - (p - max)).
        m = jnp.max(p, axis=-1, keepdims=True)
        shifted = p - m
        lse = jnp.log(jnp.sum(jnp.exp(shifted), axis=-1, keepdims=True))
        prod = t * (lse - shifted)                 # (TN, C)

        @pl.when(tile_start + tn <= n_rows)
        def _():
            # Interior tile: every row valid, no masking work at all.
            acc_ref[...] += _fold_rows(prod)

        @pl.when(tile_start + tn > n_rows)
        def _():
            # Ragged tail tile: mask out-of-bounds rows (single select on the
            # product, so garbage/NaN from padded block rows cannot leak).
            row_ids = tile_start + lax.broadcasted_iota(jnp.int32, (tn, 1), 0)
            acc_ref[...] += _fold_rows(jnp.where(row_ids < n_rows, prod, 0.0))

    # On the last tile of this split, collapse to this split's scalar partial.
    @pl.when(j == tiles_per_split - 1)
    def _():
        out_ref[...] = jnp.sum(acc_ref[...], axis=(0, 1), keepdims=True)


def soft_label_loss(pred, target, *, tn=None, n_split=None,
                    vmem_limit_bytes=None):
    """pred, target: (N, C) arrays (f32 or bf16). Returns scalar f32 mean loss."""
    n, c = pred.shape
    assert target.shape == (n, c)

    itemsize = max(jnp.dtype(pred.dtype).itemsize,
                   jnp.dtype(target.dtype).itemsize)

    vmem_cap, num_tc = _tpu_params()
    if vmem_limit_bytes is None:
        # Leave ~25% of physical VMEM for compiler-internal scratch, output
        # buffers and semaphores: ~48 MiB on v7x, ~96 MiB on v5e/v6e.
        vmem_limit_bytes = int(vmem_cap * 3 // 4)
    if tn is None:
        tn = _choose_tn(n, c, itemsize, budget_bytes=vmem_limit_bytes // 2)
    tn = max(8, (int(tn) // 8) * 8)

    num_tiles = pl.cdiv(n, tn)
    if n_split is None:
        n_split = num_tc            # 2 on v7x (2 TCs/chip), 1 on v5e/v6e
    n_split = max(1, min(int(n_split), num_tiles))
    tiles_per_split = pl.cdiv(num_tiles, n_split)

    def row_block(g, j):
        # Clamp so padded (g, j) steps re-read the last real tile; their
        # compute is skipped inside the kernel.
        return jnp.minimum(g * tiles_per_split + j, num_tiles - 1)

    kernel = functools.partial(_soft_label_loss_kernel, n_rows=n, tn=tn)

    partials = pl.pallas_call(
        kernel,
        out_shape=jax.ShapeDtypeStruct((n_split, 1, 1), jnp.float32),
        grid_spec=pltpu.PrefetchScalarGridSpec(
            num_scalar_prefetch=0,
            grid=(n_split, tiles_per_split),
            in_specs=[
                pl.BlockSpec((tn, c), lambda g, j: (row_block(g, j), 0)),
                pl.BlockSpec((tn, c), lambda g, j: (row_block(g, j), 0)),
            ],
            out_specs=pl.BlockSpec((None, 1, 1), lambda g, j: (g, 0, 0)),
            scratch_shapes=[pltpu.VMEM((8, c), jnp.float32)],
        ),
        compiler_params=pltpu.CompilerParams(
            dimension_semantics=("parallel", "arbitrary"),
            vmem_limit_bytes=int(vmem_limit_bytes),
        ),
    )(pred, target)

    # Combine the per-split partial sums and take the mean over all rows.
    return jnp.sum(partials) / jnp.float32(n)


def soft_label_loss_ref(pred, target):
    logp = jax.nn.log_softmax(pred.astype(jnp.float32), axis=-1)
    loss = jnp.sum(-target.astype(jnp.float32) * logp, axis=-1)
    return jnp.mean(loss)


if __name__ == "__main__":
    key = jax.random.PRNGKey(0)
    ks = jax.random.split(key, 8)

    # 1) Small f32 case, C < 128 (exercises the generic path, single tile).
    N, C = 16, 32
    pred = jax.random.normal(ks[0], (N, C), dtype=jnp.float32)
    target = jax.nn.softmax(
        jax.random.normal(ks[1], (N, C), dtype=jnp.float32), axis=-1)
    out = jax.block_until_ready(soft_label_loss(pred, target))
    ref = jax.block_until_ready(soft_label_loss_ref(pred, target))
    assert np.allclose(np.asarray(out), np.asarray(ref),
                       rtol=1e-5, atol=1e-5), (out, ref)

    # 2) Ragged row count + bf16 streaming + lane-dense class dim.
    N2, C2 = 50, 128
    pred2 = jax.random.normal(ks[2], (N2, C2), dtype=jnp.float32).astype(jnp.bfloat16)
    target2 = jax.nn.softmax(
        jax.random.normal(ks[3], (N2, C2), dtype=jnp.float32), axis=-1
    ).astype(jnp.bfloat16)
    out2 = jax.block_until_ready(soft_label_loss(pred2, target2))
    ref2 = jax.block_until_ready(soft_label_loss_ref(pred2, target2))
    assert np.allclose(np.asarray(out2), np.asarray(ref2),
                       rtol=1e-4, atol=1e-4), (out2, ref2)

    # 3) Multi-tile reduction split across the leading parallel axis
    #    (per-core partials path, ragged tail + skipped clamped padding tile).
    N3, C3 = 200, 128
    pred3 = jax.random.normal(ks[4], (N3, C3), dtype=jnp.float32)
    target3 = jax.nn.softmax(
        jax.random.normal(ks[5], (N3, C3), dtype=jnp.float32), axis=-1)
    out3 = jax.block_until_ready(soft_label_loss(pred3, target3, tn=32, n_split=2))
    ref3 = jax.block_until_ready(soft_label_loss_ref(pred3, target3))
    assert np.allclose(np.asarray(out3), np.asarray(ref3),
                       rtol=1e-5, atol=1e-5), (out3, ref3)

    # 4) Default (large) tile sizing: one full 2048-row tile + ragged tail,
    #    exercising the ILP fold and the big-block streaming path.
    N4, C4 = 2560, 128
    pred4 = jax.random.normal(ks[6], (N4, C4), dtype=jnp.float32)
    target4 = jax.nn.softmax(
        jax.random.normal(ks[7], (N4, C4), dtype=jnp.float32), axis=-1)
    out4 = jax.block_until_ready(soft_label_loss(pred4, target4))
    ref4 = jax.block_until_ready(soft_label_loss_ref(pred4, target4))
    assert np.allclose(np.asarray(out4), np.asarray(ref4),
                       rtol=1e-4, atol=1e-5), (out4, ref4)

    print("KERNEL_OK")
</pallas_src>

<mosaic_0001>
module attributes {stable_mosaic.version = 11 : i64} {
  func.func @_soft_label_loss_kernel(%arg0: i32, %arg1: i32, %arg2: memref<16x32xf32, #tpu.memory_space<vmem>>, %arg3: memref<16x32xf32, #tpu.memory_space<vmem>>, %arg4: memref<1x1x1xf32, #tpu.memory_space<vmem>>, %arg5: memref<8x32xf32, #tpu.memory_space<vmem>>) attributes {dimension_semantics = [#tpu.dimension_semantics<parallel>, #tpu.dimension_semantics<arbitrary>], iteration_bounds = array<i64: 1, 1>, scalar_prefetch = 0 : i64, scratch_operands = 1 : i64, tpu.core_type = #tpu.core_type<tc>, window_params = [{transform_indices = @transform_0, window_bounds = array<i64: 16, 32>}, {transform_indices = @transform_1, window_bounds = array<i64: 16, 32>}, {transform_indices = @transform_2, window_bounds = array<i64: 1, 1, 1>}]} {
    %c0_i32 = arith.constant 0 : i32
    %0 = arith.cmpi eq, %arg1, %c0_i32 : i32
    %1 = arith.extui %0 : i1 to i32
    %c0_i32_0 = arith.constant 0 : i32
    %2 = arith.cmpi ne, %1, %c0_i32_0 : i32
    scf.if %2 {
      %cst = arith.constant 0.000000e+00 : f32
      %12 = vector.broadcast %cst : f32 to vector<8x32xf32>
      %c0 = arith.constant 0 : index
      %c0_5 = arith.constant 0 : index
      %13 = vector.load %arg5[%c0, %c0_5] : memref<8x32xf32, #tpu.memory_space<vmem>>, vector<8x32xf32>
      tpu.vector_store %arg5[%c0, %c0_5], %12 {strides = array<i32>} : memref<8x32xf32, #tpu.memory_space<vmem>>, vector<8x32xf32>,
    } else {
    }
    %c1_i32 = arith.constant 1 : i32
    %3 = arith.muli %arg0, %c1_i32 : i32
    %4 = arith.addi %3, %arg1 : i32
    %c16_i32 = arith.constant 16 : i32
    %5 = arith.muli %4, %c16_i32 : i32
    %c16_i32_1 = arith.constant 16 : i32
    %6 = arith.cmpi slt, %5, %c16_i32_1 : i32
    %7 = arith.extui %6 : i1 to i32
    %c0_i32_2 = arith.constant 0 : i32
    %8 = arith.cmpi ne, %7, %c0_i32_2 : i32
    scf.if %8 {
      %c0 = arith.constant 0 : index
      %c0_5 = arith.constant 0 : index
      %12 = vector.load %arg2[%c0, %c0_5] : memref<16x32xf32, #tpu.memory_space<vmem>>, vector<16x32xf32>
      %c0_6 = arith.constant 0 : index
      %c0_7 = arith.constant 0 : index
      %13 = vector.load %arg3[%c0_6, %c0_7] : memref<16x32xf32, #tpu.memory_space<vmem>>, vector<16x32xf32>
      %cst = arith.constant dense<0xFF800000> : vector<16xf32>
      %14 = vector.multi_reduction <maximumf>, %12, %cst [1] : vector<16x32xf32> to vector<16xf32>
      %15 = vector.shape_cast %14 : vector<16xf32> to vector<16x1xf32>
      %16 = vector.broadcast %15 : vector<16x1xf32> to vector<16x32xf32>
      %17 = arith.subf %12, %16 : vector<16x32xf32>
      %18 = math.exp %17 : vector<16x32xf32>
      %cst_8 = arith.constant dense<0.000000e+00> : vector<16xf32>
      %19 = vector.multi_reduction <add>, %18, %cst_8 [1] : vector<16x32xf32> to vector<16xf32>
      %20 = vector.shape_cast %19 : vector<16xf32> to vector<16x1xf32>
      %21 = math.log %20 : vector<16x1xf32>
      %22 = vector.broadcast %21 : vector<16x1xf32> to vector<16x32xf32>
      %23 = arith.subf %22, %17 : vector<16x32xf32>
      %24 = arith.mulf %13, %23 : vector<16x32xf32>
      %c16_i32_9 = arith.constant 16 : i32
      %25 = arith.addi %5, %c16_i32_9 : i32
      %c16_i32_10 = arith.constant 16 : i32
      %26 = arith.cmpi sle, %25, %c16_i32_10 : i32
      %27 = arith.extui %26 : i1 to i32
      %c0_i32_11 = arith.constant 0 : i32
      %28 = arith.cmpi ne, %27, %c0_i32_11 : i32
      scf.if %28 {
        %c0_15 = arith.constant 0 : index
        %c0_16 = arith.constant 0 : index
        %33 = vector.load %arg5[%c0_15, %c0_16] : memref<8x32xf32, #tpu.memory_space<vmem>>, vector<8x32xf32>
        %34 = vector.extract_strided_slice %24 {offsets = [0, 0], sizes = [8, 32], strides = [1, 1]} : vector<16x32xf32> to vector<8x32xf32>
        %35 = vector.extract_strided_slice %24 {offsets = [8, 0], sizes = [8, 32], strides = [1, 1]} : vector<16x32xf32> to vector<8x32xf32>
        %36 = arith.addf %34, %35 : vector<8x32xf32>
        %37 = arith.addf %33, %36 : vector<8x32xf32>
        %c0_17 = arith.constant 0 : index
        %c0_18 = arith.constant 0 : index
        %38 = vector.load %arg5[%c0_17, %c0_18] : memref<8x32xf32, #tpu.memory_space<vmem>>, vector<8x32xf32>
        tpu.vector_store %arg5[%c0_17, %c0_18], %37 {strides = array<i32>} : memref<8x32xf32, #tpu.memory_space<vmem>>, vector<8x32xf32>,
      } else {
      }
      %c16_i32_12 = arith.constant 16 : i32
      %29 = arith.addi %5, %c16_i32_12 : i32
      %c16_i32_13 = arith.constant 16 : i32
      %30 = arith.cmpi sgt, %29, %c16_i32_13 : i32
      %31 = arith.extui %30 : i1 to i32
      %c0_i32_14 = arith.constant 0 : i32
      %32 = arith.cmpi ne, %31, %c0_i32_14 : i32
      scf.if %32 {
        %33 = tpu.iota {dimensions = array<i32: 0>} : vector<16x1xi32>
        %34 = vector.broadcast %5 : i32 to vector<16x1xi32>
        %35 = arith.addi %34, %33 : vector<16x1xi32>
        %c0_15 = arith.constant 0 : index
        %c0_16 = arith.constant 0 : index
        %36 = vector.load %arg5[%c0_15, %c0_16] : memref<8x32xf32, #tpu.memory_space<vmem>>, vector<8x32xf32>
        %c16_i32_17 = arith.constant 16 : i32
        %37 = vector.broadcast %c16_i32_17 : i32 to vector<16x1xi32>
        %38 = arith.cmpi slt, %35, %37 : vector<16x1xi32>
        %cst_18 = arith.constant 0.000000e+00 : f32
        %39 = vector.shape_cast %38 : vector<16x1xi1> to vector<16x1xi1>
        %40 = vector.broadcast %39 : vector<16x1xi1> to vector<16x32xi1>
        %41 = vector.broadcast %cst_18 : f32 to vector<16x32xf32>
        %42 = arith.select %40, %24, %41 : vector<16x32xi1>, vector<16x32xf32>
        %43 = vector.extract_strided_slice %42 {offsets = [0, 0], sizes = [8, 32], strides = [1, 1]} : vector<16x32xf32> to vector<8x32xf32>
        %44 = vector.extract_strided_slice %42 {offsets = [8, 0], sizes = [8, 32], strides = [1, 1]} : vector<16x32xf32> to vector<8x32xf32>
        %45 = arith.addf %43, %44 : vector<8x32xf32>
        %46 = arith.addf %36, %45 : vector<8x32xf32>
        %c0_19 = arith.constant 0 : index
        %c0_20 = arith.constant 0 : index
        %47 = vector.load %arg5[%c0_19, %c0_20] : memref<8x32xf32, #tpu.memory_space<vmem>>, vector<8x32xf32>
        tpu.vector_store %arg5[%c0_19, %c0_20], %46 {strides = array<i32>} : memref<8x32xf32, #tpu.memory_space<vmem>>, vector<8x32xf32>,
      } else {
      }
    } else {
    }
    %c0_i32_3 = arith.constant 0 : i32
    %9 = arith.cmpi eq, %arg1, %c0_i32_3 : i32
    %10 = arith.extui %9 : i1 to i32
    %c0_i32_4 = arith.constant 0 : i32
    %11 = arith.cmpi ne, %10, %c0_i32_4 : i32
    scf.if %11 {
      %c0 = arith.constant 0 : index
      %c0_5 = arith.constant 0 : index
      %12 = vector.load %arg5[%c0, %c0_5] : memref<8x32xf32, #tpu.memory_space<vmem>>, vector<8x32xf32>
      %13 = vector.shape_cast %12 : vector<8x32xf32> to vector<1x8x32xf32>
      %cst = arith.constant dense<0.000000e+00> : vector<1xf32>
      %14 = vector.multi_reduction <add>, %13, %cst [1, 2] : vector<1x8x32xf32> to vector<1xf32>
      %15 = vector.shape_cast %14 : vector<1xf32> to vector<1x1x1xf32>
      %16 = vector.extract %15[0, 0, 0] : f32 from vector<1x1x1xf32>
      %17 = vector.broadcast %16 : f32 to vector<1x1xf32>
      %c0_6 = arith.constant 0 : index
      %c0_7 = arith.constant 0 : index
      %c0_8 = arith.constant 0 : index
      %18 = vector.load %arg4[%c0_6, %c0_7, %c0_8] : memref<1x1x1xf32, #tpu.memory_space<vmem>>, vector<1x1x1xf32>
      %19 = vector.shape_cast %18 : vector<1x1x1xf32> to vector<1x1xf32>
      %20 = vector.shape_cast %17 : vector<1x1xf32> to vector<1x1x1xf32>
      tpu.vector_store %arg4[%c0_6, %c0_7, %c0_8], %20 {strides = array<i32>} : memref<1x1x1xf32, #tpu.memory_space<vmem>>, vector<1x1x1xf32>,
    } else {
    }
    return
  }
  func.func @transform_0(%arg0: i32, %arg1: i32) -> (i32, i32) {
    %c1_i32 = arith.constant 1 : i32
    %0 = arith.muli %arg0, %c1_i32 : i32
    %1 = arith.addi %0, %arg1 : i32
    %c0_i32 = arith.constant 0 : i32
    %2 = arith.minsi %1, %c0_i32 : i32
    %c0_i32_0 = arith.constant 0 : i32
    %c0_i32_1 = arith.constant 0 : i32
    return %2, %c0_i32_0 : i32, i32
  }
  func.func @transform_1(%arg0: i32, %arg1: i32) -> (i32, i32) {
    %c1_i32 = arith.constant 1 : i32
    %0 = arith.muli %arg0, %c1_i32 : i32
    %1 = arith.addi %0, %arg1 : i32
    %c0_i32 = arith.constant 0 : i32
    %2 = arith.minsi %1, %c0_i32 : i32
    %c0_i32_0 = arith.constant 0 : i32
    %c0_i32_1 = arith.constant 0 : i32
    return %2, %c0_i32_0 : i32, i32
  }
  func.func @transform_2(%arg0: i32, %arg1: i32) -> (i32, i32, i32) {
    %c0_i32 = arith.constant 0 : i32
    %c0_i32_0 = arith.constant 0 : i32
    %c0_i32_1 = arith.constant 0 : i32
    return %arg0, %c0_i32, %c0_i32_0 : i32, i32, i32
  }
}

</mosaic_0001>

<bundles_post_ra>
// kernel: tpu_custom_call.1
= control target key start
LH: loop header
LB: loop body
LE: loop exit
PB: predicated region body
PF: predicated region fallthrough
CT: control target
= control target key end

     0   :  { %7 = vsyncpa [#allocation4], 0  ;;  %s309_s0 = inlined_call_operand.hbm [shape: f32[16,32], index: 0, kind: input, shape index: {}]   ;;  %s310_s1 = inlined_call_operand.hbm [shape: f32[16,32], index: 1, kind: input, shape index: {}]   ;;  %s311_s2 = inlined_call_operand.hbm [shape: f32[1,1,1], index: 2, kind: output, shape index: {}]  }
   0x1   :  { %8 = vsyncpa [#allocation7], 0 }
   0x2   :  { %9 = vsyncpa [#allocation5], 0  ;;  %s20_s11 = sshll.u32 %s309_s0, 4  ;;  %s272_s12 = smov [#allocation3]   ;;  %s21_s11 = int_to_ptr.hbm [resolvable:$true] %s20_s11 }
   0x3   :  { %s22_s13 = sshll.u32 %s272_s12, 4  ;;  %s39_s16 = sshll.u32 %s310_s1, 4  ;;  %s23_s13 = int_to_ptr.vmem [resolvable:$true] %s22_s13  ;;  %s40_s16 = int_to_ptr.hbm [resolvable:$true] %s39_s16 }
   0x4   :  { %s273_s17 = smov 128   ;;  %s274_s18 = smov 8  }
   0x5   :  { %28 = dma.hbm_to_vmem [thread:$0]  %s21_s11, 256, %s23_s13, [#allocation4], %s273_s17, %s273_s17, %s274_s18  }
   0x6   :  { %s275_s19 = smov [#allocation6]  }
   0x7   :  { %s41_s20 = sshll.u32 %s275_s19, 4  ;;  %s42_s20 = int_to_ptr.vmem [resolvable:$true] %s41_s20 }
   0x8   :  { %47 = dma.hbm_to_vmem [thread:$0]  %s40_s16, 256, %s42_s20, [#allocation7], %s273_s17, %s273_s17, %s274_s18  }
   0x9   :  { %266 = dma.done.wait [#allocation4], 256  }
   0xa   :  { %267 = vsyncadd [#allocation4], 4294967040 }
   0xb   :  { %268 = dma.done.wait [#allocation7], 256  }
   0xc   :  { %269 = vsyncadd [#allocation7], 4294967040  ;;  %vm68_vm0 = vcmask 261120   ;;  %v76_v0 = vld [vmem:[#allocation3] sm:$0xff]  ;;  %v77_v2 = vld [vmem:[#allocation3 + $0x8] sm:$0xff]  ;;  %v276_v14 = vmov 0.0  }
   0xd   :  { %v81_v1 = vsel %vm68_vm0, %v76_v0, -inf  ;;  %v84_v3 = vsel %vm68_vm0, %v77_v2, -inf  ;;  %69 = vst.msk [vmem:[#allocation2] sm:$0xff] %vm68_vm0, %v276_v14  ;;  %v78_v22 = vld [vmem:[#allocation6] sm:$0xff]  ;;  %v79_v23 = vld [vmem:[#allocation6 + $0x8] sm:$0xff]  ;;  %s277_s0 = smov [#allocation8]  }
   0xe   :  { %82 = vmax.xlane.f32.xlu0 %v81_v1  ;;  %s161_s1 = sshll.u32 %s277_s0, 4  ;;  %s163_s23 = sshll.u32 %s311_s2, 4  ;;  %vm154_vm1 = vcmask 0   ;;  %s162_s1 = int_to_ptr.vmem [resolvable:$true] %s161_s1  ;;  %s164_s23 = int_to_ptr.hbm [resolvable:$true] %s163_s23 }
  0x14   :  { %v112_v27 = vld [vmem:[#allocation2] sm:$0xff] }
  0x16   :  { %85 = vmax.xlane.f32.xlu0 %v84_v3 }
  0x81   :  { %v83_v4 = vpop.xlane.xlu0 %82 }
  0x82   :  { %v87_v5 = vsub.f32 %v76_v0, %v83_v4 }
  0x84   :  { %v89_v6 = vmul.f32 1.442695, %v87_v5 }
  0x86   :  { %186 = vpow2.f32 %v89_v6 }
  0x89   :  { %v86_v7 = vpop.xlane.xlu0 %85 }
  0x8a   :  { %v88_v8 = vsub.f32 %v77_v2, %v86_v7 }
  0x8c   :  { %v187_v9 = vpop.eup %186  ;;  %v91_v10 = vmul.f32 1.442695, %v88_v8 }
  0x8d   :  { %v93_v11 = vsel %vm68_vm0, %v187_v9, 0.0 }
  0x8e   :  { %188 = vpow2.f32 %v91_v10  ;;  %94 = vadd.xlane.f32.xlu1 %v93_v11 }
  0x94   :  { %v189_v12 = vpop.eup %188 }
  0x95   :  { %v96_v13 = vsel %vm68_vm0, %v189_v12, 0.0 }
  0x96   :  { %97 = vadd.xlane.f32.xlu1 %v96_v13 }
 0x101   :  { %v95_v15 = vpop.xlane.xlu1 %94 }
 0x102   :  { %190 = vlog2.f32 %v95_v15 }
 0x108   :  { %v191_v17 = vpop.eup %190 }
 0x109   :  { %v98_v16 = vpop.xlane.xlu1 %97  ;;  %v100_v18 = vmul.f32 0.6931472, %v191_v17 }
 0x10a   :  { %192 = vlog2.f32 %v98_v16 }
 0x10b   :  { %v103_v20 = vsub.f32 %v100_v18, %v87_v5 }
 0x10d   :  { %v105_v25 = vmul.f32 %v103_v20, %v78_v22 }
 0x110   :  { %v193_v19 = vpop.eup %192 }
 0x111   :  { %v102_v21 = vmul.f32 0.6931472, %v193_v19 }
 0x113   :  { %v104_v24 = vsub.f32 %v102_v21, %v88_v8 }
 0x115   :  { %v106_v26 = vmul.f32 %v104_v24, %v79_v23 }
 0x117   :  { %v113_v28 = vadd.f32 %v106_v26, %v105_v25 }
 0x119   :  { %v114_v29 = vadd.f32 %v113_v28, %v112_v27 }
 0x11b   :  { %115 = vst.msk [vmem:[#allocation2] sm:$0xff] %vm68_vm0, %v114_v29 }
 0x122   :  { %v141_v30 = vld [vmem:[#allocation2] sm:$0xff] }
 0x123   :  { %v143_v31 = vsel %vm68_vm0, %v141_v30, 0.0 }
 0x124   :  { %144 = vadd.xlane.f32.xlu2 %v143_v31 }
 0x197   :  { %v145_v32 = vpop.xlane.xlu2 %144 }
 0x198   :  { %v146_v33 = vrot.slane %v145_v32, 4 }
 0x19a   :  { %v147_v34 = vadd.f32 %v146_v33, %v145_v32 }
 0x19c   :  { %v148_v35 = vrot.slane %v147_v34, 2 }
 0x19e   :  { %v149_v36 = vadd.f32 %v148_v35, %v147_v34 }
 0x1a0   :  { %v150_v37 = vrot.slane %v149_v36, 1 }
 0x1a2   :  { %v151_v38 = vadd.f32 %v150_v37, %v149_v36 }
 0x1a4   :  { %178 = vpush %v151_v38 }
 0x1d5   :  { %s179_s24 = spop %178 }
 0x1d6   :  { %v153_v39 = vstv %s179_s24 }
 0x1d7   :  { %155 = vst.msk [vmem:[#allocation8] sm:$0x1] %vm154_vm1, %v153_v39 }
 0x1d8   :  { %166 = dma.vmem_to_hbm [thread:$0]  %s162_s1, 16, %s164_s23, [#allocation5]  }
 0x1d9   :  { %270 = dma.done.wait [#allocation5], 16  }
 0x1da   :  { %271 = vsyncadd [#allocation5], 4294967280 }
 0x1db   :  { %171 = vsyncpa [#allocation4], 1 }
 0x1dc   :  { %172 = vsyncpa [#allocation7], 1 }
 0x1dd   :  { %173 = vsyncpa [#allocation5], 1 }

</bundles_post_ra>
